<compile_context>
chip_gen: v6e
topology: v6e:2x2x1
jax: 0.10.0
libtpu: 0.0.40
codegen_flags: <defaults>
</compile_context>

<pallas_src>
import functools

import jax
import jax.numpy as jnp
from jax.experimental import pallas as pl
from jax.experimental.pallas import tpu as pltpu

_LANE = 128


def _round_up(x, m):
    return ((x + m - 1) // m) * m


def _round_down(x, m):
    return (x // m) * m


def _layernorm_kernel(x_ref, g_ref, b_ref, o_ref, *, eps, inv_c):
    # x_ref block: (1, C, tT) -> work on the (C, tT) tile.
    x = x_ref[0].astype(jnp.float32)                         # (C, tT)

    # Two-pass statistics over channels (sublane axis): mean first, then the
    # centered second moment. Robust (no cancellation) and free of extra HBM
    # traffic since the tile is already resident in VMEM.
    mean = jnp.sum(x, axis=0, keepdims=True) * inv_c          # (1, tT)
    xc = x - mean                                             # (C, tT)
    var = jnp.sum(xc * xc, axis=0, keepdims=True) * inv_c     # (1, tT)
    inv_std = jax.lax.rsqrt(var + eps)                        # (1, tT)

    # y = (x - mean) * inv_std * gamma + beta, with gamma/beta lane-broadcast
    # from (C, 1). Avoids materializing full-tile scale/shift temporaries.
    # NOTE: all ops are lane-local; the final partial time block's
    # out-of-bounds lanes may hold garbage/NaN but are discarded by the
    # masked store. Do not add any cross-lane (time-axis) op here.
    o_ref[0] = ((xc * inv_std) * g_ref[...] + b_ref[...]).astype(o_ref.dtype)


def _vmem_capacity_bytes():
    try:
        return int(pltpu.get_tpu_info().vmem_capacity_bytes)
    except Exception:
        # Be conservative: v7x has the smallest VMEM (64 MiB per TC).
        return 64 * 1024 * 1024


def _choose_time_tile(B, C, T, itemsize, vmem_phys):
    """Pick a lane-dense time tile sized from the device's VMEM budget."""
    if T <= _LANE:
        # Tiny time axis: use the full dim (no masking, single lane-block).
        return T

    budget = vmem_phys // 4  # headroom for compiler scratch / pipelining
    # Per lane column: double-buffered input + output blocks (x dtype) plus
    # ~3 full-tile f32 temporaries inside the body (x cast, xc, xhat).
    bytes_per_lane = C * (4 * itemsize + 3 * 4)
    tT = _round_down(max(budget // bytes_per_lane, _LANE), _LANE)
    # Cap so the tile never exceeds T (only the trailing T % tT lanes of the
    # last block get masked), and past ~2048 lanes returns diminish.
    tT = max(_LANE, min(tT, _round_down(T, _LANE), 2048))

    # Keep enough grid steps for double-buffer overlap and for v7x's two
    # TensorCores (both grid axes are "parallel").
    while tT > _LANE and B * ((T + tT - 1) // tT) < 8:
        tT = max(_LANE, _round_down(tT // 2, _LANE))
    return tT


def layer_norm(x, gamma, beta, eps=1e-4):
    """LayerNorm over the channel dim (axis=1) of x with shape (B, C, T)."""
    B, C, T = x.shape
    itemsize = jnp.dtype(x.dtype).itemsize
    vmem_phys = _vmem_capacity_bytes()
    tT = _choose_time_tile(B, C, T, itemsize, vmem_phys)
    num_t = (T + tT - 1) // tT  # last block store-masked if T % tT != 0

    gamma2d = gamma.reshape(C, 1).astype(jnp.float32)
    beta2d = beta.reshape(C, 1).astype(jnp.float32)

    kernel = functools.partial(
        _layernorm_kernel, eps=float(eps), inv_c=1.0 / float(C)
    )

    # Scoped VMEM: in/out double buffers + f32 full-tile temporaries + slack,
    # floored at 16 MiB and kept under the physical capacity.
    block_bytes = C * tT * itemsize
    vmem_limit = 4 * block_bytes + 4 * C * tT * 4 + (8 << 20)
    vmem_limit = max(vmem_limit, 16 << 20)
    vmem_limit = min(vmem_limit, max(vmem_phys - (8 << 20), 16 << 20))

    return pl.pallas_call(
        kernel,
        out_shape=jax.ShapeDtypeStruct((B, C, T), x.dtype),
        grid=(B, num_t),
        in_specs=[
            # lane-dense (1, C, tT) slab per (batch, time-tile) grid point
            pl.BlockSpec((1, C, tT), lambda b, t: (b, 0, t)),
            # per-channel affine params: constant block index -> resident,
            # no per-step re-DMA
            pl.BlockSpec((C, 1), lambda b, t: (0, 0)),
            pl.BlockSpec((C, 1), lambda b, t: (0, 0)),
        ],
        out_specs=pl.BlockSpec((1, C, tT), lambda b, t: (b, 0, t)),
        compiler_params=pltpu.CompilerParams(
            dimension_semantics=("parallel", "parallel"),
            vmem_limit_bytes=int(vmem_limit),
        ),
        # TODO(synk): if profiling shows exposed DMA with very small C,
        # add pipeline_mode=pl.Buffered(3) to the x/out BlockSpecs.
    )(x, gamma2d, beta2d)


def _reference(x, gamma, beta, eps):
    C = x.shape[1]
    mean = jnp.mean(x, axis=1, keepdims=True)
    var = jnp.mean((x - mean) ** 2, axis=1, keepdims=True)
    y = (x - mean) * jax.lax.rsqrt(var + eps)
    return y * gamma.reshape(1, C, 1) + beta.reshape(1, C, 1)


if __name__ == "__main__":
    key = jax.random.PRNGKey(0)
    eps = 1e-4

    # Case 1: shapes consistent with DurationPredictor usage, gamma=ones,
    # beta=zeros as in nn.Module.__init__.
    B, C, T = 2, 4, 16
    k1, k2, k3 = jax.random.split(key, 3)
    x = jax.random.normal(k1, (B, C, T), dtype=jnp.float32)
    gamma = jnp.ones((C,), dtype=jnp.float32)
    beta = jnp.zeros((C,), dtype=jnp.float32)
    out = jax.block_until_ready(layer_norm(x, gamma, beta, eps))
    assert jnp.allclose(out, _reference(x, gamma, beta, eps), atol=1e-5, rtol=1e-5)

    # Case 2: exercises the masked (non-divisible) last time block and a
    # non-trivial affine.
    B2, C2, T2 = 2, 8, 200
    x2 = jax.random.normal(k2, (B2, C2, T2), dtype=jnp.float32) * 3.0 + 5.0
    gamma2 = jax.random.normal(k3, (C2,), dtype=jnp.float32)
    beta2 = jnp.linspace(-1.0, 1.0, C2, dtype=jnp.float32)
    out2 = jax.block_until_ready(layer_norm(x2, gamma2, beta2, eps))
    assert jnp.allclose(out2, _reference(x2, gamma2, beta2, eps), atol=1e-4, rtol=1e-4)

    print("KERNEL_OK")
</pallas_src>

<mosaic_0001>
module attributes {stable_mosaic.version = 11 : i64} {
  func.func @_layernorm_kernel(%arg0: i32, %arg1: i32, %arg2: memref<1x4x16xf32, #tpu.memory_space<vmem>>, %arg3: memref<4x1xf32, #tpu.memory_space<vmem>>, %arg4: memref<4x1xf32, #tpu.memory_space<vmem>>, %arg5: memref<1x4x16xf32, #tpu.memory_space<vmem>>) attributes {dimension_semantics = [#tpu.dimension_semantics<parallel>, #tpu.dimension_semantics<parallel>], iteration_bounds = array<i64: 2, 1>, scalar_prefetch = 0 : i64, scratch_operands = 0 : i64, tpu.core_type = #tpu.core_type<tc>, window_params = [{transform_indices = @transform_0, window_bounds = array<i64: 1, 4, 16>}, {pipeline_mode = #tpu.pipeline_mode<synchronous>, transform_indices = @transform_1, window_bounds = array<i64: 4, 1>}, {pipeline_mode = #tpu.pipeline_mode<synchronous>, transform_indices = @transform_2, window_bounds = array<i64: 4, 1>}, {transform_indices = @transform_3, window_bounds = array<i64: 1, 4, 16>}]} {
    %c0 = arith.constant 0 : index
    %c0_0 = arith.constant 0 : index
    %c0_1 = arith.constant 0 : index
    %0 = vector.load %arg2[%c0, %c0_0, %c0_1] : memref<1x4x16xf32, #tpu.memory_space<vmem>>, vector<1x4x16xf32>
    %1 = vector.shape_cast %0 : vector<1x4x16xf32> to vector<4x16xf32>
    %cst = arith.constant dense<0.000000e+00> : vector<16xf32>
    %2 = vector.multi_reduction <add>, %1, %cst [0] : vector<4x16xf32> to vector<16xf32>
    %3 = vector.shape_cast %2 : vector<16xf32> to vector<1x16xf32>
    %cst_2 = arith.constant 2.500000e-01 : f32
    %4 = vector.broadcast %cst_2 : f32 to vector<1x16xf32>
    %5 = arith.mulf %3, %4 : vector<1x16xf32>
    %6 = vector.broadcast %5 : vector<1x16xf32> to vector<4x16xf32>
    %7 = arith.subf %1, %6 : vector<4x16xf32>
    %8 = arith.mulf %7, %7 : vector<4x16xf32>
    %cst_3 = arith.constant dense<0.000000e+00> : vector<16xf32>
    %9 = vector.multi_reduction <add>, %8, %cst_3 [0] : vector<4x16xf32> to vector<16xf32>
    %10 = vector.shape_cast %9 : vector<16xf32> to vector<1x16xf32>
    %cst_4 = arith.constant 2.500000e-01 : f32
    %11 = vector.broadcast %cst_4 : f32 to vector<1x16xf32>
    %12 = arith.mulf %10, %11 : vector<1x16xf32>
    %cst_5 = arith.constant 9.99999974E-5 : f32
    %13 = vector.broadcast %cst_5 : f32 to vector<1x16xf32>
    %14 = arith.addf %12, %13 : vector<1x16xf32>
    %15 = math.rsqrt %14 : vector<1x16xf32>
    %16 = vector.broadcast %15 : vector<1x16xf32> to vector<4x16xf32>
    %17 = arith.mulf %7, %16 : vector<4x16xf32>
    %c0_6 = arith.constant 0 : index
    %c0_7 = arith.constant 0 : index
    %18 = vector.load %arg3[%c0_6, %c0_7] : memref<4x1xf32, #tpu.memory_space<vmem>>, vector<4x1xf32>
    %19 = vector.broadcast %18 : vector<4x1xf32> to vector<4x16xf32>
    %20 = arith.mulf %17, %19 : vector<4x16xf32>
    %c0_8 = arith.constant 0 : index
    %c0_9 = arith.constant 0 : index
    %21 = vector.load %arg4[%c0_8, %c0_9] : memref<4x1xf32, #tpu.memory_space<vmem>>, vector<4x1xf32>
    %22 = vector.broadcast %21 : vector<4x1xf32> to vector<4x16xf32>
    %23 = arith.addf %20, %22 : vector<4x16xf32>
    %c0_10 = arith.constant 0 : index
    %c0_11 = arith.constant 0 : index
    %c0_12 = arith.constant 0 : index
    %24 = vector.load %arg5[%c0_10, %c0_11, %c0_12] : memref<1x4x16xf32, #tpu.memory_space<vmem>>, vector<1x4x16xf32>
    %25 = vector.shape_cast %24 : vector<1x4x16xf32> to vector<4x16xf32>
    %26 = vector.shape_cast %23 : vector<4x16xf32> to vector<1x4x16xf32>
    tpu.vector_store %arg5[%c0_10, %c0_11, %c0_12], %26 {strides = array<i32>} : memref<1x4x16xf32, #tpu.memory_space<vmem>>, vector<1x4x16xf32>,
    return
  }
  func.func @transform_0(%arg0: i32, %arg1: i32) -> (i32, i32, i32) {
    %c0_i32 = arith.constant 0 : i32
    %c0_i32_0 = arith.constant 0 : i32
    return %arg0, %c0_i32, %arg1 : i32, i32, i32
  }
  func.func @transform_1(%arg0: i32, %arg1: i32) -> (i32, i32) {
    %c0_i32 = arith.constant 0 : i32
    %c0_i32_0 = arith.constant 0 : i32
    %c0_i32_1 = arith.constant 0 : i32
    return %c0_i32, %c0_i32_0 : i32, i32
  }
  func.func @transform_2(%arg0: i32, %arg1: i32) -> (i32, i32) {
    %c0_i32 = arith.constant 0 : i32
    %c0_i32_0 = arith.constant 0 : i32
    %c0_i32_1 = arith.constant 0 : i32
    return %c0_i32, %c0_i32_0 : i32, i32
  }
  func.func @transform_3(%arg0: i32, %arg1: i32) -> (i32, i32, i32) {
    %c0_i32 = arith.constant 0 : i32
    %c0_i32_0 = arith.constant 0 : i32
    return %arg0, %c0_i32, %arg1 : i32, i32, i32
  }
}

</mosaic_0001>

<bundles_post_ra>
// kernel: tpu_custom_call.1
= control target key start
LH: loop header
LB: loop body
LE: loop exit
PB: predicated region body
PF: predicated region fallthrough
CT: control target
= control target key end

     0   :  { %8 = vsyncpa [#allocation3], 0  ;;  %s593_s0 = inlined_call_operand.vmem [shape: f32[2,4,16], index: 0, kind: input, shape index: {}]   ;;  %s594_s1 = inlined_call_operand.vmem [shape: f32[4,1], index: 1, kind: input, shape index: {}]   ;;  %s595_s2 = inlined_call_operand.vmem [shape: f32[4,1], index: 2, kind: input, shape index: {}]   ;;  %s596_s3 = inlined_call_operand.hbm [shape: f32[2,4,16], index: 3, kind: output, shape index: {}]  }
   0x1   :  { %10 = vsyncpa [#allocation3 + $0x1], 0  ;;  %s485_s12 = smov 0   ;;  %s487_s13 = smov 0  }
   0x2   :  { %s489_s14 = smov 0   ;;  %s491_s15 = smov 0  }
   0x3   :  { %s493_s16 = smov 0   ;;  %s495_s17 = smov 0  }
   0x4 LB: > { %s315_s18 = sadd.s32 4294967295, %s461_s17   ;;  %s316_s19 = sadd.s32 4294967294, %s461_s17   ;;  %s461_s17 = sphi %s495_s17, %s16_s17   ;;  %s457_s16 = sphi %s493_s16, %s603_s16   ;;  %s453_s15 = sphi %s491_s15, %s602_s15   ;;  %s449_s14 = sphi %s489_s14, %s601_s14   ;;  %s445_s13 = sphi %s487_s13, %s600_s13   ;;  %s441_s12 = sphi %s485_s12, %s599_s12  }
   0x5   : > { %s28_s20 = sadd.s32 1, %s457_s16  ;;  %s107_s21 = sadd.s32 1, %s449_s14 }
   0x6   : > { %p30_p0 = scmp.ge.s32.totalorder %s28_s20, 2  ;;  %p117_p1 = scmp.ne.s32.totalorder %s449_s14, %s445_s13 }
   0x7   : > { %p118_p2 = scmp.eq.s32.totalorder %s315_s18, 1  ;;  %p123_p3 = scmp.ne.s32.totalorder %s445_s13, %s441_s12 }
   0x8   : > { %s605_s20 = smov (%p30_p0, %s28_s20), 0  ;;  %p124_p5 = scmp.eq.s32.totalorder %s316_s19, 1 }
   0x9   : > { %p525_p4 = por %p118_p2, %p117_p1  ;;  %s102_s23 = ssub.s32 %s457_s16, %s605_s20 }
   0xa   : > { %p319_p6 = scmp.ge.s32.totalorder %s461_s17, 1  ;;  %p105_p7 = scmp.eq.s32.totalorder %s102_s23, 0 }
   0xb   : > { %p532_p8 = por %p124_p5, %p123_p3  ;;  %p158_p9 = scmp.lt.s32.totalorder %s461_s17, 3 }
   0xc   : > { %s538_s25 = scalar_select %p105_p7, %s449_s14, %s107_s21  }
   0xd   : > { %p159_p10 = pnand %p319_p6, %p158_p9 }
   0xe   : > { %p184_p11 = scmp.lt.s32.totalorder (!%p159_p10), %s453_s15, 1  ;;  %s181_s8 = sand.u32 (!%p159_p10), 1, %s445_s13  }
   0xf   : > { %162 = sbr.rel (%p159_p10) target bundleno = 165 (0xa5), region = 32  ;;  %s320_s9 = sshll.u32 (!%p159_p10), %s181_s8, 2 }
  0x10   : > { %s323_s10 = sshll.u32 (!%p159_p10), %s453_s15, 6  ;;  %s183_s11 = scalar_lea.vmem (!%p159_p10), [#allocation2], %s320_s9 }
  0x11   : > { %s244_s18 = sshll.u32 (!%p159_p10), %s183_s11, 4  ;;  %s242_s23 = scalar_lea.hbm (!%p159_p10), %s596_s3, %s323_s10  ;;  %s245_s18 = int_to_ptr.vmem [resolvable:$true] %s244_s18 }
  0x12   : > { %s230_s26 = scalar_lea.sflag (!%p159_p10), [#allocation3], %s181_s8  ;;  %s385_s27 = scalar_lea.vmem (!%p159_p10), %s245_s18, 64 }
  0x13   : > { %p386_p12 = scmp.ne.s32.totalorder (!%p159_p10), %s245_s18, %s385_s27  ;;  %s464_s28 = smov (!%p159_p10), [#allocation2]  }
  0x14   : > { %v214_v0 = vld [vmem:[%s594_s1] sm:$0xf]  ;;  %v463_v1 = vmov 0   ;;  %s185_s30 = scalar_select %p184_p11, %s453_s15, 1  ;;  %vm192_vm0 = vcmask 125952  }
  0x15   : > { %382 = vset.pattern.permute.xlu0 %v463_v1  ;;  %v221_v2 = vld [vmem:[%s595_s2] sm:$0xf]  ;;  %p387_p13 = pnand %p386_p12, %p525_p4  ;;  %s389_s15 = sshll.u32 %s464_s28, 4  ;;  %s390_s15 = int_to_ptr.vmem [resolvable:$false] %s389_s15 }
  0x16   : > { %217 = vperm.xlu0 %382, %v214_v0   ;;  %s321_s4 = sshll.u32 %s185_s30, 2  ;;  %s391_s29 = scalar_lea.vmem %s390_s15, 128 }
  0x17   : > { %s190_s7 = scalar_lea.vmem %s593_s0, %s321_s4  ;;  %p388_p0 = pneg %p387_p13 }
  0x18   : > { %v191_v3 = vld [vmem:[%s190_s7] sm:$0xf]  ;;  %p392_p1 = scmp.lt.s32.totalorder %s245_s18, %s390_s15  ;;  %p393_p2 = scmp.lt.s32.totalorder %s391_s29, %s385_s27 }
  0x19   : > { %v193_v4 = vsel %vm192_vm0, %v191_v3, 0.0 }
  0x1a   : > { %224 = vperm.xlu0 %382, %v221_v2   ;;  %v194_v5 = vrot.slane %v193_v4, 4  ;;  %p394_p3 = por %p393_p2, %p392_p1 }
  0x1c   : > { %v195_v6 = vadd.f32 %v194_v5, %v193_v4  ;;  %p395_p5 = pnand %p394_p3, %p388_p0 }
  0x1e   : > { %v196_v7 = vrot.slane %v195_v6, 2 }
  0x20   : > { %v197_v8 = vadd.f32 %v196_v7, %v195_v6 }
  0x22   : > { %v198_v9 = vrot.slane %v197_v8, 1 }
  0x24   : > { %v199_v10 = vadd.f32 %v198_v9, %v197_v8 }
  0x26   : > { %v200_v11 = vmul.f32 0.25, %v199_v10 }
  0x28   : > { %v201_v12 = vsub.f32 %v191_v3, %v200_v11 }
  0x2a   : > { %v202_v13 = vmul.f32 %v201_v12, %v201_v12 }
  0x2c   : > { %v203_v14 = vsel %vm192_vm0, %v202_v13, 0.0 }
  0x2d   : > { %v204_v15 = vrot.slane %v203_v14, 4 }
  0x2f   : > { %v205_v16 = vadd.f32 %v204_v15, %v203_v14 }
  0x31   : > { %v206_v17 = vrot.slane %v205_v16, 2 }
  0x33   : > { %v207_v18 = vadd.f32 %v206_v17, %v205_v16 }
  0x35   : > { %v208_v19 = vrot.slane %v207_v18, 1 }
  0x37   : > { %v209_v20 = vadd.f32 %v208_v19, %v207_v18 }
  0x39   : > { %v210_v21 = vmul.f32 0.25, %v209_v20 }
  0x3b   : > { %v211_v22 = vadd.f32 0.0001, %v210_v21 }
  0x3d   : > { %383 = vrsqrt.f32 %v211_v22 }
  0x4a   : > { %v384_v23 = vpop.eup %383 }
  0x4b   : > { %v213_v24 = vmul.f32 %v384_v23, %v201_v12 }
  0x91   : > { %v218_v25 = vpop.permute.xlu0 %217 }
  0x92   : > { %v220_v26 = vmul.f32 %v218_v25, %v213_v24 }
  0x95   : > { %v225_v27 = vpop.permute.xlu0 %224 }
  0x96   : > { %v227_v28 = vadd.f32 %v225_v27, %v220_v26 }
  0x98   : > { %228 = vst.msk [vmem:[%s183_s11] sm:$0xf] %vm192_vm0, %v227_v28 }
  0x99   : > { %398 = shalt.err (!%p395_p5)
}
  0x9a   : > { %s399_s30 = scalar_lea.hbm %s242_s23, 64  ;;  %s403_s6 = scalar_lea.hbm %s596_s3, 128 }
  0x9b   : > { %p400_p6 = scmp.ne.s32.totalorder %s242_s23, %s399_s30  ;;  %p404_p10 = scmp.lt.s32.totalorder %s242_s23, %s596_s3 }
  0x9c   : > { %p405_p11 = scmp.lt.s32.totalorder %s403_s6, %s399_s30 }
  0x9d   : > { %p401_p7 = pnand %p400_p6, %p525_p4 }
  0x9e   : > { %p406_p12 = por %p405_p11, %p404_p10 }
  0x9f   : > { %p402_p9 = pneg %p401_p7 }
  0xa1   : > { %p407_p13 = pnand %p406_p12, %p402_p9 }
  0xa3   : > { %410 = shalt.err (!%p407_p13)
}
  0xa4   : > { %326 = dma.vmem_to_hbm [thread:$0]  (%p525_p4), %s245_s18, 64, %s242_s23, %s230_s26  }
  0xa5 PF: > { %p332_p0 = scmp.ge.s32.totalorder %s461_s17, 2  ;;  %s256_s9 = sand.u32 1, %s441_s12  }
  0xa6   : > { %s257_s10 = scalar_lea.sflag [#allocation3], %s256_s9 }
  0xa7   : > { %p329_p1 = pnand %p332_p0, %p532_p8 }
  0xa9   : > { %p330_p2 = pneg %p329_p1 }
  0xab   : > { %436 = dma.done.wait (%p330_p2), %s257_s10, 64  }
  0xac   : > { %438 = vsyncadd (%p330_p2), %s257_s10, 4294967232  ;;  %s16_s17 = sadd.s32 1, %s461_s17   ;;  %s599_s12 = smov %s445_s13 }
  0xad   : > { %p13_p3 = scmp.ge.s32.totalorder %s16_s17, 4   ;;  %s600_s13 = smov %s449_s14 }
  0xae   : > { %s601_s14 = smov %s538_s25  ;;  %s602_s15 = smov %s457_s16 }
  0xaf   : > { %s603_s16 = smov %s605_s20  ;;  %15 = sbr.rel (!%p13_p3) target bundleno = 4 (0x4), region = 67 }
  0xb4   :  { %262 = vsyncpa [#allocation3], 1 }
  0xb5   :  { %264 = vsyncpa [#allocation3 + $0x1], 1 }

</bundles_post_ra>
